<compile_context>
chip_gen: v6e
topology: v6e:2x2x1
jax: 0.10.0
libtpu: 0.0.40
codegen_flags: <defaults>
</compile_context>

<pallas_src>
import jax
import jax.numpy as jnp
from jax.experimental import pallas as pl
from jax.experimental.pallas import tpu as pltpu


# ----------------------------------------------------------------------------
# Path 1 (default): single HBM -> HBM DMA, no VMEM staging, no grid.
# ----------------------------------------------------------------------------
def _dma_flatten_kernel(x_hbm, o_hbm, sem):
    cp = pltpu.make_async_copy(x_hbm, o_hbm, sem)
    cp.start()
    cp.wait()


def _flatten_dma(x2, B, N, itemsize):
    return pl.pallas_call(
        _dma_flatten_kernel,
        out_shape=jax.ShapeDtypeStruct((B, N), x2.dtype),
        in_specs=[pl.BlockSpec(memory_space=pl.ANY)],
        out_specs=pl.BlockSpec(memory_space=pl.ANY),
        scratch_shapes=[pltpu.SemaphoreType.DMA],
        cost_estimate=pl.CostEstimate(
            flops=0, transcendentals=0, bytes_accessed=2 * B * N * itemsize
        ),
    )(x2)


# ----------------------------------------------------------------------------
# Path 2 (optional, for fusion contexts): tiled VMEM identity copy.
# ----------------------------------------------------------------------------
def _copy_kernel(x_ref, o_ref):
    # Layout-matched identity copy of one (bm, bn) tile: pure lane-dense
    # vld/vst; the DMA pipeline is the only bottleneck.
    o_ref[...] = x_ref[...]


def _flatten_vmem_tiled(x2, B, N, itemsize, target_tile_bytes):
    # Sublane pack: 8 rows (4-byte), 16 (2-byte), 32 (1-byte) dtypes.
    sub = max(8, 32 // itemsize)
    bm = B if B <= sub else sub

    # Lane tile: large multiple of 128, capped at the per-buffer byte budget.
    lane = 128
    cap = max(lane, ((target_tile_bytes // (bm * itemsize)) // lane) * lane)
    bn = N if N <= cap else cap

    # Grow bm past the sublane pack when N is small, so each tile still
    # approaches the byte budget (small-N / large-B FC-head flattens).
    if B > bm and bm * bn * itemsize < target_tile_bytes:
        want = (target_tile_bytes // (bn * itemsize)) // sub * sub
        bm = min(B, max(sub, want))

    # Modest B: full-extent row block avoids a ragged, masked last row-block.
    if sub < B <= 64 and B * bn * itemsize <= target_tile_bytes:
        bm = B

    grid = (pl.cdiv(B, bm), pl.cdiv(N, bn))

    return pl.pallas_call(
        _copy_kernel,
        out_shape=jax.ShapeDtypeStruct((B, N), x2.dtype),
        grid_spec=pltpu.PrefetchScalarGridSpec(
            num_scalar_prefetch=0,
            grid=grid,
            in_specs=[pl.BlockSpec((bm, bn), lambda i, j: (i, j))],
            out_specs=pl.BlockSpec((bm, bn), lambda i, j: (i, j)),
        ),
        compiler_params=pltpu.CompilerParams(
            dimension_semantics=("parallel", "parallel"),
            # Explicit so 4 MiB tiles are safe on v5e's 16 MiB scoped default
            # while staying well inside v7x's 64 MiB physical VMEM.
            vmem_limit_bytes=32 * 1024 * 1024,
        ),
        cost_estimate=pl.CostEstimate(
            flops=0, transcendentals=0, bytes_accessed=2 * B * N * itemsize
        ),
    )(x2)


# ----------------------------------------------------------------------------
# Public wrapper (matches torch's x.view(x.size(0), -1)).
# ----------------------------------------------------------------------------
def flatten(x, *, mode="dma", target_tile_bytes=4 * 1024 * 1024):
    """Pallas equivalent of torch's x.view(x.size(0), -1)."""
    B = x.shape[0]
    N = 1
    for d in x.shape[1:]:
        N *= d

    # Metadata-only on contiguous input: this IS the flatten.  The kernel
    # below only materializes the result into a fresh buffer.
    x2 = x.reshape(B, N)
    itemsize = jnp.dtype(x.dtype).itemsize

    if mode == "dma":
        return _flatten_dma(x2, B, N, itemsize)
    elif mode == "vmem_tiled":
        return _flatten_vmem_tiled(x2, B, N, itemsize, target_tile_bytes)
    else:
        raise ValueError(f"unknown mode: {mode!r}")


if __name__ == "__main__":
    key = jax.random.PRNGKey(0)

    # Primary test: shapes consistent with the module usage.
    B, C, H, W = 2, 4, 16, 16
    x = jax.random.normal(key, (B, C, H, W), dtype=jnp.float32)
    ref = x.reshape(B, -1)

    # Default (HBM->HBM DMA) path.
    y = jax.block_until_ready(flatten(x))
    assert y.shape == (B, C * H * W), y.shape
    assert y.dtype == x.dtype
    assert jnp.array_equal(y, ref), "dma flatten mismatch vs reshape reference"

    # Tiled-VMEM path (fusion-style form).
    y_t = jax.block_until_ready(flatten(x, mode="vmem_tiled"))
    assert jnp.array_equal(y_t, ref), "tiled flatten mismatch vs reshape reference"

    # Secondary test: non-128-aligned flat width and odd batch.
    x2 = jax.random.normal(jax.random.PRNGKey(1), (3, 3, 5, 7), dtype=jnp.float32)
    ref2 = x2.reshape(3, -1)
    y2 = jax.block_until_ready(flatten(x2))
    assert jnp.array_equal(y2, ref2), "ragged-shape dma flatten mismatch"
    y2_t = jax.block_until_ready(flatten(x2, mode="vmem_tiled"))
    assert jnp.array_equal(y2_t, ref2), "ragged-shape tiled flatten mismatch"

    print("KERNEL_OK")
</pallas_src>

<mosaic_0001>
module attributes {stable_mosaic.version = 11 : i64} {
  func.func @_dma_flatten_kernel(%arg0: memref<2x1024xf32, #tpu.memory_space<any>>, %arg1: memref<2x1024xf32, #tpu.memory_space<any>>, %arg2: memref<!tpu.dma_semaphore, #tpu.memory_space<semaphore_mem>>) attributes {dimension_semantics = [], scalar_prefetch = 0 : i64, scratch_operands = 1 : i64, tpu.core_type = #tpu.core_type<tc>} {
    tpu.enqueue_dma source(%arg0 : memref<2x1024xf32, #tpu.memory_space<any>>) target(%arg1 : memref<2x1024xf32, #tpu.memory_space<any>>) target_semaphore(%arg2 : memref<!tpu.dma_semaphore, #tpu.memory_space<semaphore_mem>>)
    tpu.wait_dma2 semaphore(%arg2 : memref<!tpu.dma_semaphore, #tpu.memory_space<semaphore_mem>>) src(%arg0 : memref<2x1024xf32, #tpu.memory_space<any>>) dst(%arg1 : memref<2x1024xf32, #tpu.memory_space<any>>)
    return
  }
}

</mosaic_0001>

<bundles_post_ra>
// kernel: tpu_custom_call.1
= control target key start
LH: loop header
LB: loop body
LE: loop exit
PB: predicated region body
PF: predicated region fallthrough
CT: control target
= control target key end

     0   :  { %s29_s6 = smov [#allocation2]   ;;  %s30_s7 = smov 131072   ;;  %s48_s0 = inlined_call_operand.hbm [shape: f32[2,1024], index: 0, kind: input, shape index: {}]   ;;  %s49_s1 = inlined_call_operand.hbm [shape: f32[2,1024], index: 1, kind: output, shape index: {}]  }
   0x1   :  { %s31_s8 = smov 0  }
   0x2   :  { %12 = dma.general %s48_s0, 256, %s49_s1, %s29_s6, %s30_s7, [#allocation4], %s31_s8, 0  }
   0x3   :  { %27 = dma.done.wait [#allocation2], 256 }
   0x4   :  { %28 = vsyncadd [#allocation2], 4294967040 }
   0x5   :  { %17 = vsyncmov [#allocation2] }
   0x8   :  { %s18_s13 = vpop.sfrf %17 }
   0x9   :  { %p23_p0 = scmp.ne.s32.totalorder %s18_s13, 0 }
   0xb   :  { %22 = shalt.err (%p23_p0)  }

</bundles_post_ra>
